<compile_context>
chip_gen: v5e
topology: v5e:2x2
jax: 0.10.0
libtpu: 0.0.40
codegen_flags: <defaults>
</compile_context>

<pallas_src>
import functools

import jax
import jax.numpy as jnp
from jax.experimental import pallas as pl
from jax.experimental.pallas import tpu as pltpu

LANES = 128
SUBLANES = 8
TARGET_ROWS_PER_BLOCK = 2048   # 2048*128*4B = 1 MiB per f32 input tile
NUM_SPLITS = 2                 # parallel grid axis (megacore on v7x, serial elsewhere)


def _round_up(v, m):
    return -(-v // m) * m


def _focal_partial_kernel(x_ref, t_ref, o_ref, *, n, alpha, gamma, logits,
                          binary_targets):
    c = pl.program_id(0)
    j = pl.program_id(1)

    @pl.when(j == 0)
    def _():
        o_ref[...] = jnp.zeros_like(o_ref)

    rows, lanes = x_ref.shape
    base_row = (c * pl.num_programs(1) + j) * rows

    # Valid-element mask computed in-kernel (no third HBM stream).
    row_ids = jax.lax.broadcasted_iota(jnp.int32, (rows, lanes), 0)
    lane_ids = jax.lax.broadcasted_iota(jnp.int32, (rows, lanes), 1)
    valid = (base_row + row_ids) * lanes + lane_ids < n

    x = x_ref[...].astype(jnp.float32)
    t = t_ref[...].astype(jnp.float32)

    if logits:
        # binary_cross_entropy_with_logits (numerically stable form):
        #   max(x, 0) - x*t + log(1 + exp(-|x|))
        bce = jnp.maximum(x, 0.0) - x * t + jnp.log1p(jnp.exp(-jnp.abs(x)))
        pt = jnp.exp(-bce)
    else:
        # Keep logs finite on padded / invalid lanes regardless of pad value.
        x = jnp.where(valid, x, 0.5)
        t = jnp.where(valid, t, 0.5)
        if binary_targets:
            # Exact for t in {0,1}: single transcendental per element.
            pt = t * x + (1.0 - t) * (1.0 - x)
            bce = -jnp.maximum(jnp.log(pt), -100.0)
        else:
            # General (soft-label) path; PyTorch clamps each log term at -100.
            log_p = jnp.maximum(jnp.log(x), -100.0)
            log_1mp = jnp.maximum(jnp.log(1.0 - x), -100.0)
            bce = -(t * log_p + (1.0 - t) * log_1mp)
            pt = jnp.exp(-bce)

    one_minus_pt = jnp.maximum(1.0 - pt, 0.0)  # guard pt rounding slightly > 1
    if gamma == 2.0:
        focal_w = one_minus_pt * one_minus_pt
    elif gamma == 1.0:
        focal_w = one_minus_pt
    elif gamma == 0.0:
        focal_w = jnp.ones_like(one_minus_pt)
    else:
        focal_w = jnp.power(one_minus_pt, gamma)

    f_loss = jnp.where(valid, alpha * focal_w * bce, 0.0)

    # Fold (rows,128) -> (8,128) with VPU adds and accumulate into the
    # grid-resident output block (no scratch, no per-step XLU reduce).
    o_ref[...] += f_loss.reshape(rows // SUBLANES, SUBLANES, lanes).sum(axis=0)


def focal_loss(inputs, targets, *, alpha=1.0, gamma=2.0, logits=False,
               reduce=True, binary_targets=False):
    """Mirrors FocalLoss.forward (defaults: alpha=1, gamma=2, logits=False, reduce=True)."""
    n = int(inputs.size)
    x_flat = inputs.reshape(-1)
    t_flat = targets.reshape(-1)

    rows_needed = max(1, -(-n // LANES))
    rows_per_block = min(TARGET_ROWS_PER_BLOCK, _round_up(rows_needed, SUBLANES))
    blocks_total = -(-rows_needed // rows_per_block)
    blocks_per_split = -(-blocks_total // NUM_SPLITS)
    rows_padded = NUM_SPLITS * blocks_per_split * rows_per_block

    pad = rows_padded * LANES - n
    if pad:
        x_flat = jnp.pad(x_flat, (0, pad))
        t_flat = jnp.pad(t_flat, (0, pad))
    x2 = x_flat.reshape(rows_padded, LANES)
    t2 = t_flat.reshape(rows_padded, LANES)

    in_spec = pl.BlockSpec(
        (rows_per_block, LANES),
        lambda c, j, bps=blocks_per_split: (c * bps + j, 0))
    out_spec = pl.BlockSpec((SUBLANES, LANES), lambda c, j: (c, 0))

    kernel = functools.partial(
        _focal_partial_kernel, n=n, alpha=float(alpha), gamma=float(gamma),
        logits=logits, binary_targets=binary_targets)

    partials = pl.pallas_call(
        kernel,
        out_shape=jax.ShapeDtypeStruct((NUM_SPLITS * SUBLANES, LANES), jnp.float32),
        grid_spec=pltpu.PrefetchScalarGridSpec(
            num_scalar_prefetch=0,
            grid=(NUM_SPLITS, blocks_per_split),
            in_specs=[in_spec, in_spec],
            out_specs=out_spec,
        ),
        compiler_params=pltpu.CompilerParams(
            dimension_semantics=("parallel", "arbitrary")),
    )(x2, t2)

    total = jnp.sum(partials)
    if reduce:
        return total / jnp.float32(n)           # torch.mean(F_loss)
    return jnp.log(total + jnp.float32(1e-6))   # torch.log(sum(F_loss) + 1e-6)


if __name__ == "__main__":
    key = jax.random.PRNGKey(0)
    k1, k2 = jax.random.split(key)

    # NCHW, small shapes: batch=2, channels=4, spatial=16x16.
    raw = jax.random.normal(k1, (2, 4, 16, 16), dtype=jnp.float32)
    probs = jax.nn.sigmoid(raw)  # probabilities (logits=False path)
    targets = (jax.random.uniform(k2, (2, 4, 16, 16)) > 0.5).astype(jnp.float32)

    # Pure-JAX references.
    log_p = jnp.maximum(jnp.log(probs), -100.0)
    log_1mp = jnp.maximum(jnp.log(1.0 - probs), -100.0)
    bce = -(targets * log_p + (1.0 - targets) * log_1mp)
    pt = jnp.exp(-bce)
    f_ref = 1.0 * (1.0 - pt) ** 2 * bce
    ref_mean = jnp.mean(f_ref)
    ref_logsum = jnp.log(jnp.sum(f_ref) + 1e-6)

    bce_l = jnp.maximum(raw, 0.0) - raw * targets + jnp.log1p(jnp.exp(-jnp.abs(raw)))
    pt_l = jnp.exp(-bce_l)
    ref_logits_mean = jnp.mean((1.0 - pt_l) ** 2 * bce_l)

    out_mean = focal_loss(probs, targets, alpha=1.0, gamma=2.0, logits=False, reduce=True)
    out_mean_bin = focal_loss(probs, targets, alpha=1.0, gamma=2.0, logits=False,
                              reduce=True, binary_targets=True)
    out_logsum = focal_loss(probs, targets, alpha=1.0, gamma=2.0, logits=False, reduce=False)
    out_logits = focal_loss(raw, targets, alpha=1.0, gamma=2.0, logits=True, reduce=True)
    jax.block_until_ready((out_mean, out_mean_bin, out_logsum, out_logits))

    assert jnp.allclose(out_mean, ref_mean, rtol=1e-5, atol=1e-6), (out_mean, ref_mean)
    assert jnp.allclose(out_mean_bin, ref_mean, rtol=1e-5, atol=1e-6), (out_mean_bin, ref_mean)
    assert jnp.allclose(out_logsum, ref_logsum, rtol=1e-5, atol=1e-6), (out_logsum, ref_logsum)
    assert jnp.allclose(out_logits, ref_logits_mean, rtol=1e-5, atol=1e-6), (out_logits, ref_logits_mean)

    print("KERNEL_OK")
</pallas_src>

<mosaic_0001>
module attributes {stable_mosaic.version = 11 : i64} {
  func.func @_focal_partial_kernel(%arg0: i32, %arg1: i32, %arg2: memref<16x128xf32, #tpu.memory_space<vmem>>, %arg3: memref<16x128xf32, #tpu.memory_space<vmem>>, %arg4: memref<8x128xf32, #tpu.memory_space<vmem>>) attributes {dimension_semantics = [#tpu.dimension_semantics<parallel>, #tpu.dimension_semantics<arbitrary>], iteration_bounds = array<i64: 2, 1>, scalar_prefetch = 0 : i64, scratch_operands = 0 : i64, tpu.core_type = #tpu.core_type<tc>, window_params = [{transform_indices = @transform_0, window_bounds = array<i64: 16, 128>}, {transform_indices = @transform_1, window_bounds = array<i64: 16, 128>}, {transform_indices = @transform_2, window_bounds = array<i64: 8, 128>}]} {
    %c0_i32 = arith.constant 0 : i32
    %0 = arith.cmpi eq, %arg1, %c0_i32 : i32
    %1 = arith.extui %0 : i1 to i32
    %c0_i32_0 = arith.constant 0 : i32
    %2 = arith.cmpi ne, %1, %c0_i32_0 : i32
    scf.if %2 {
      %cst_20 = arith.constant 0.000000e+00 : f32
      %54 = vector.broadcast %cst_20 : f32 to vector<8x128xf32>
      %c0_21 = arith.constant 0 : index
      %c0_22 = arith.constant 0 : index
      %55 = vector.load %arg4[%c0_21, %c0_22] : memref<8x128xf32, #tpu.memory_space<vmem>>, vector<8x128xf32>
      tpu.vector_store %arg4[%c0_21, %c0_22], %54 {strides = array<i32>} : memref<8x128xf32, #tpu.memory_space<vmem>>, vector<8x128xf32>,
    } else {
    }
    %c1_i32 = arith.constant 1 : i32
    %3 = arith.muli %arg0, %c1_i32 : i32
    %4 = arith.addi %3, %arg1 : i32
    %c16_i32 = arith.constant 16 : i32
    %5 = arith.muli %4, %c16_i32 : i32
    %6 = tpu.iota {dimensions = array<i32: 0>} : vector<16x128xi32>
    %7 = tpu.iota {dimensions = array<i32: 1>} : vector<16x128xi32>
    %8 = vector.broadcast %5 : i32 to vector<16x128xi32>
    %9 = arith.addi %8, %6 : vector<16x128xi32>
    %c128_i32 = arith.constant 128 : i32
    %10 = vector.broadcast %c128_i32 : i32 to vector<16x128xi32>
    %11 = arith.muli %9, %10 : vector<16x128xi32>
    %12 = arith.addi %11, %7 : vector<16x128xi32>
    %c2048_i32 = arith.constant 2048 : i32
    %13 = vector.broadcast %c2048_i32 : i32 to vector<16x128xi32>
    %14 = arith.cmpi slt, %12, %13 : vector<16x128xi32>
    %c0 = arith.constant 0 : index
    %c0_1 = arith.constant 0 : index
    %15 = vector.load %arg2[%c0, %c0_1] : memref<16x128xf32, #tpu.memory_space<vmem>>, vector<16x128xf32>
    %c0_2 = arith.constant 0 : index
    %c0_3 = arith.constant 0 : index
    %16 = vector.load %arg3[%c0_2, %c0_3] : memref<16x128xf32, #tpu.memory_space<vmem>>, vector<16x128xf32>
    %cst = arith.constant 5.000000e-01 : f32
    %17 = vector.broadcast %cst : f32 to vector<16x128xf32>
    %18 = arith.select %14, %15, %17 : vector<16x128xi1>, vector<16x128xf32>
    %cst_4 = arith.constant 5.000000e-01 : f32
    %19 = vector.broadcast %cst_4 : f32 to vector<16x128xf32>
    %20 = arith.select %14, %16, %19 : vector<16x128xi1>, vector<16x128xf32>
    %21 = math.log %18 : vector<16x128xf32>
    %cst_5 = arith.constant -1.000000e+02 : f32
    %22 = vector.broadcast %cst_5 : f32 to vector<16x128xf32>
    %23 = arith.maximumf %21, %22 : vector<16x128xf32>
    %cst_6 = arith.constant 1.000000e+00 : f32
    %24 = vector.broadcast %cst_6 : f32 to vector<16x128xf32>
    %25 = arith.subf %24, %18 : vector<16x128xf32>
    %26 = math.log %25 : vector<16x128xf32>
    %cst_7 = arith.constant -1.000000e+02 : f32
    %27 = vector.broadcast %cst_7 : f32 to vector<16x128xf32>
    %28 = arith.maximumf %26, %27 : vector<16x128xf32>
    %29 = arith.mulf %20, %23 : vector<16x128xf32>
    %cst_8 = arith.constant 1.000000e+00 : f32
    %30 = vector.broadcast %cst_8 : f32 to vector<16x128xf32>
    %31 = arith.subf %30, %20 : vector<16x128xf32>
    %32 = arith.mulf %31, %28 : vector<16x128xf32>
    %33 = arith.addf %29, %32 : vector<16x128xf32>
    %cst_9 = arith.constant 0.000000e+00 : f32
    %34 = vector.broadcast %cst_9 : f32 to vector<16x128xf32>
    %35 = arith.subf %34, %33 : vector<16x128xf32>
    %cst_10 = arith.constant 0.000000e+00 : f32
    %36 = vector.broadcast %cst_10 : f32 to vector<16x128xf32>
    %37 = arith.subf %36, %35 : vector<16x128xf32>
    %38 = math.exp %37 : vector<16x128xf32>
    %cst_11 = arith.constant 1.000000e+00 : f32
    %39 = vector.broadcast %cst_11 : f32 to vector<16x128xf32>
    %40 = arith.subf %39, %38 : vector<16x128xf32>
    %cst_12 = arith.constant 0.000000e+00 : f32
    %41 = vector.broadcast %cst_12 : f32 to vector<16x128xf32>
    %42 = arith.maximumf %40, %41 : vector<16x128xf32>
    %43 = arith.mulf %42, %42 : vector<16x128xf32>
    %cst_13 = arith.constant 1.000000e+00 : f32
    %44 = vector.broadcast %cst_13 : f32 to vector<16x128xf32>
    %45 = arith.mulf %44, %43 : vector<16x128xf32>
    %46 = arith.mulf %45, %35 : vector<16x128xf32>
    %cst_14 = arith.constant 0.000000e+00 : f32
    %47 = vector.broadcast %cst_14 : f32 to vector<16x128xf32>
    %48 = arith.select %14, %46, %47 : vector<16x128xi1>, vector<16x128xf32>
    %c0_15 = arith.constant 0 : index
    %c0_16 = arith.constant 0 : index
    %49 = vector.load %arg4[%c0_15, %c0_16] : memref<8x128xf32, #tpu.memory_space<vmem>>, vector<8x128xf32>
    %50 = vector.shape_cast %48 : vector<16x128xf32> to vector<2x8x128xf32>
    %cst_17 = arith.constant dense<0.000000e+00> : vector<8x128xf32>
    %51 = vector.multi_reduction <add>, %50, %cst_17 [0] : vector<2x8x128xf32> to vector<8x128xf32>
    %52 = arith.addf %49, %51 : vector<8x128xf32>
    %c0_18 = arith.constant 0 : index
    %c0_19 = arith.constant 0 : index
    %53 = vector.load %arg4[%c0_18, %c0_19] : memref<8x128xf32, #tpu.memory_space<vmem>>, vector<8x128xf32>
    tpu.vector_store %arg4[%c0_18, %c0_19], %52 {strides = array<i32>} : memref<8x128xf32, #tpu.memory_space<vmem>>, vector<8x128xf32>,
    return
  }
  func.func @transform_0(%arg0: i32, %arg1: i32) -> (i32, i32) {
    %c1_i32 = arith.constant 1 : i32
    %0 = arith.muli %arg0, %c1_i32 : i32
    %1 = arith.addi %0, %arg1 : i32
    %c0_i32 = arith.constant 0 : i32
    %c0_i32_0 = arith.constant 0 : i32
    return %1, %c0_i32 : i32, i32
  }
  func.func @transform_1(%arg0: i32, %arg1: i32) -> (i32, i32) {
    %c1_i32 = arith.constant 1 : i32
    %0 = arith.muli %arg0, %c1_i32 : i32
    %1 = arith.addi %0, %arg1 : i32
    %c0_i32 = arith.constant 0 : i32
    %c0_i32_0 = arith.constant 0 : i32
    return %1, %c0_i32 : i32, i32
  }
  func.func @transform_2(%arg0: i32, %arg1: i32) -> (i32, i32) {
    %c0_i32 = arith.constant 0 : i32
    %c0_i32_0 = arith.constant 0 : i32
    return %arg0, %c0_i32 : i32, i32
  }
}

</mosaic_0001>

<bundles_post_ra>
// kernel: tpu_custom_call.1
= control target key start
LH: loop header
LB: loop body
LE: loop exit
PB: predicated region body
PF: predicated region fallthrough
CT: control target
= control target key end

     0   :  { %7 = vsyncpa [#allocation3], 0  ;;  %s837_s0 = inlined_call_operand.hbm [shape: f32[32,128], index: 0, kind: input, shape index: {}]   ;;  %s838_s1 = inlined_call_operand.hbm [shape: f32[32,128], index: 1, kind: input, shape index: {}]   ;;  %s839_s2 = inlined_call_operand.hbm [shape: f32[16,128], index: 2, kind: output, shape index: {}]  }
   0x1   :  { %9 = vsyncpa [#allocation3 + $0x1], 0 }
   0x2   :  { %10 = vsyncpa [#allocation6], 0 }
   0x3   :  { %12 = vsyncpa [#allocation6 + $0x1], 0 }
   0x4   :  { %13 = vsyncpa [#allocation4], 0 }
   0x5   :  { %15 = vsyncpa [#allocation4 + $0x1], 0  ;;  %s688_s9 = smov 0   ;;  %s690_s10 = smov 0  }
   0x6   :  { %s692_s11 = smov 0   ;;  %s694_s12 = smov 0  }
   0x7   :  { %s696_s13 = smov 0   ;;  %s698_s14 = smov 0  }
   0x8 LB: > { %s420_s15 = sadd.s32 4294967295, %s669_s14   ;;  %s421_s16 = sadd.s32 4294967294, %s669_s14   ;;  %s669_s14 = sphi %s698_s14, %s21_s14   ;;  %s665_s13 = sphi %s696_s13, %s849_s13   ;;  %s661_s12 = sphi %s694_s12, %s848_s12   ;;  %s657_s11 = sphi %s692_s11, %s847_s11   ;;  %s653_s10 = sphi %s690_s10, %s846_s10   ;;  %s649_s9 = sphi %s688_s9, %s845_s9  }
   0x9   : > { %s33_s17 = sadd.s32 1, %s665_s13  ;;  %s42_s18 = sadd.s32 1, %s657_s11 }
   0xa   : > { %p35_p0 = scmp.ge.s32.totalorder %s33_s17, 2  ;;  %p49_p1 = scmp.ne.s32.totalorder %s657_s11, %s653_s10 }
   0xb   : > { %p50_p2 = scmp.eq.s32.totalorder %s669_s14, 0  ;;  %p55_p3 = scmp.ne.s32.totalorder %s653_s10, %s649_s9 }
   0xc   : > { %s851_s17 = smov (%p35_p0, %s33_s17), 0  ;;  %p56_p5 = scmp.eq.s32.totalorder %s420_s15, 0 }
   0xd   : > { %p729_p4 = por %p50_p2, %p49_p1  ;;  %s39_s20 = ssub.s32 %s665_s13, %s851_s17 }
   0xe   : > { %p107_p6 = scmp.eq.s32.totalorder %s420_s15, 1  ;;  %p40_p7 = scmp.eq.s32.totalorder %s39_s20, 0 }
   0xf   : > { %p735_p8 = por %p56_p5, %p55_p3  ;;  %p113_p10 = scmp.eq.s32.totalorder %s421_s16, 1 }
  0x10   : > { %p739_p9 = por %p107_p6, %p49_p1  ;;  %p423_p12 = scmp.ge.s32.totalorder %s669_s14, 2 }
  0x11   : > { %s744_s23 = scalar_select %p40_p7, %s657_s11, %s42_s18  }
  0x12   : > { %p746_p11 = por %p113_p10, %p55_p3  ;;  %p458_p13 = scmp.lt.s32.totalorder %s669_s14, 2 }
  0x13   : > { %s753_s25 = sand.u32 1, %s657_s11   ;;  %s439_s27 = sshll.u32 %s665_s13, 4 }
  0x14   : > { %s424_s26 = sshll.u32 %s753_s25, 4  ;;  %s143_s30 = scalar_lea.hbm %s837_s0, %s439_s27 }
  0x15   : > { %s137_s3 = scalar_lea.vmem [#allocation2], %s424_s26  ;;  %s144_s5 = sshll.u32 %s143_s30, 4  ;;  %s145_s5 = int_to_ptr.hbm [resolvable:$true] %s144_s5 }
  0x16   : > { %s146_s4 = sshll.u32 %s137_s3, 4  ;;  %p762_p0 = pnand %p458_p13, %p729_p4  ;;  %s147_s4 = int_to_ptr.vmem [resolvable:$true] %s146_s4 }
  0x17   : > { %p430_p1 = scmp.ge.s32.totalorder %s669_s14, 1  ;;  %s134_s7 = scalar_lea.sflag [#allocation3], %s753_s25 }
  0x18   : > { %s671_s8 = smov 128   ;;  %s672_s15 = smov 8  }
  0x19   : > { %450 = dma.hbm_to_vmem [thread:$0]  (!%p762_p0), %s145_s5, 256, %s147_s4, %s134_s7, %s671_s8, %s671_s8, %s672_s15  }
  0x1a   : > { %p177_p2 = scmp.lt.s32.totalorder %s669_s14, 3  ;;  %s166_s20 = scalar_lea.hbm %s838_s1, %s439_s27 }
  0x1b   : > { %s167_s28 = sshll.u32 %s166_s20, 4  ;;  %s160_s19 = scalar_lea.vmem [#allocation5], %s424_s26  ;;  %s168_s28 = int_to_ptr.hbm [resolvable:$true] %s167_s28 }
  0x1c   : > { %p178_p3 = pnand %p430_p1, %p177_p2  ;;  %s169_s29 = sshll.u32 %s160_s19, 4  ;;  %s170_s29 = int_to_ptr.vmem [resolvable:$true] %s169_s29 }
  0x1d   : > { %s157_s30 = scalar_lea.sflag [#allocation6], %s753_s25  ;;  %s778_s3 = sand.u32 (!%p178_p3), 1, %s653_s10  }
  0x1e   : > { %453 = dma.hbm_to_vmem [thread:$0]  (!%p762_p0), %s168_s28, 256, %s170_s29, %s157_s30, %s671_s8, %s671_s8, %s672_s15  }
  0x1f   : > { %181 = sbr.rel (%p178_p3) target bundleno = 97 (0x61), region = 28  ;;  %s431_s4 = sshll.u32 (!%p178_p3), %s778_s3, 4 }
  0x20   : > { %s184_s5 = scalar_lea.sflag (!%p178_p3), [#allocation3], %s778_s3  ;;  %s187_s7 = scalar_lea.vmem (!%p178_p3), [#allocation2], %s431_s4 }
  0x24   : > { %636 = dma.done.wait (%p735_p8), %s184_s5, 256  }
  0x25   : > { %638 = vsyncadd (%p735_p8), %s184_s5, 4294967040  ;;  %s194_s25 = scalar_lea.sflag [#allocation6], %s778_s3  ;;  %s197_s26 = scalar_lea.vmem [#allocation5], %s431_s4 }
  0x26   : > { %640 = dma.done.wait (%p735_p8), %s194_s25, 256  }
  0x27   : > { %642 = vsyncadd (%p735_p8), %s194_s25, 4294967040  ;;  %s434_s27 = sshll.u32 %s661_s12, 4  ;;  %v235_v0 = vlaneseq  ;;  %v249_v10 = vld [vmem:[%s187_s7] sm:$0xff]  ;;  %v250_v12 = vld [vmem:[%s187_s7 + $0x8] sm:$0xff]  ;;  %s433_s21 = sshll.u32 %s778_s3, 3 }
  0x28   : > { %v240_v1 = vstv %s434_s27  ;;  %v251_v17 = vld [vmem:[%s197_s26] sm:$0xff]  ;;  %v252_v18 = vld [vmem:[%s197_s26 + $0x8] sm:$0xff]  ;;  %s436_s6 = sshll.u32 %s661_s12, 3  ;;  %s223_s18 = scalar_lea.vmem [#allocation7], %s433_s21 }
  0x29   : > { %v236_v2 = vshrl.u32 %v235_v0, 7  ;;  %v239_v4 = vand.u32 127, %v235_v0  ;;  %s312_s16 = scalar_lea.hbm %s839_s2, %s436_s6  ;;  %s314_s20 = sshll.u32 %s223_s18, 4  ;;  %s315_s20 = int_to_ptr.vmem [resolvable:$true] %s314_s20 }
  0x2a   : > { %s316_s28 = sshll.u32 %s312_s16, 4  ;;  %s302_s12 = scalar_lea.sflag [#allocation4], %s778_s3  ;;  %s317_s28 = int_to_ptr.hbm [resolvable:$true] %s316_s28 }
  0x2b   : > { %v237_v3 = vadd.s32 8, %v236_v2  ;;  %v241_v5 = vadd.s32 %v240_v1, %v236_v2  ;;  %s597_s19 = sshra.s32 %s317_s28, 4  ;;  %s603_s5 = scalar_lea.hbm %s839_s2, 16  ;;  %s598_s19 = int_to_ptr.hbm [resolvable:$true] %s597_s19 }
  0x2c   : > { %s599_s29 = scalar_lea.hbm %s598_s19, 8  ;;  %p604_p7 = scmp.lt.s32.totalorder %s598_s19, %s839_s2 }
  0x2d   : > { %v242_v6 = vadd.s32 %v240_v1, %v237_v3  ;;  %v243_v7 = vmul.u32 128, %v241_v5  ;;  %p600_p4 = scmp.ne.s32.totalorder %s598_s19, %s599_s29  ;;  %p605_p8 = scmp.lt.s32.totalorder %s603_s5, %s599_s29 }
  0x2f   : > { %v244_v8 = vmul.u32 128, %v242_v6  ;;  %v245_v9 = vadd.s32 %v243_v7, %v239_v4  ;;  %p601_p5 = pnand %p600_p4, %p739_p9  ;;  %p606_p10 = por %p605_p8, %p604_p7 }
  0x31   : > { %v246_v11 = vadd.s32 %v244_v8, %v239_v4  ;;  %vm247_vm0 = vcmp.lt.s32.totalorder %v245_v9, 2048  ;;  %p602_p6 = pneg %p601_p5 }
  0x32   : > { %v253_v13 = vsel %vm247_vm0, %v249_v10, 0.5  ;;  %v255_v20 = vsel %vm247_vm0, %v251_v17, 0.5 }
  0x33   : > { %vm248_vm1 = vcmp.lt.s32.totalorder %v246_v11, 2048  ;;  %511 = vlog2.f32 %v253_v13  ;;  %v263_v14 = vsub.f32 1.0, %v253_v13  ;;  %v273_v29 = vsub.f32 1.0, %v255_v20  ;;  %p607_p13 = pnand %p606_p10, %p602_p6 }
  0x34   : > { %v254_v15 = vsel %vm248_vm1, %v250_v12, 0.5  ;;  %v256_v23 = vsel %vm248_vm1, %v252_v18, 0.5 }
  0x35   : > { %513 = vlog2.f32 %v254_v15  ;;  %v264_v16 = vsub.f32 1.0, %v254_v15  ;;  %v274_v32 = vsub.f32 1.0, %v256_v23 }
  0x36   : > { %515 = vlog2.f32 %v263_v14 }
  0x37   : > { %517 = vlog2.f32 %v264_v16 }
  0x39   : > { %v512_v19 = vpop.eup %511 }
  0x3a   : > { %v258_v21 = vmul.f32 0.6931472, %v512_v19 }
  0x3b   : > { %v514_v22 = vpop.eup %513 }
  0x3c   : > { %v516_v24 = vpop.eup %515  ;;  %v260_v25 = vmul.f32 0.6931472, %v514_v22  ;;  %v261_v26 = vmax.f32 %v258_v21, -100.0 }
  0x3d   : > { %v518_v27 = vpop.eup %517  ;;  %v266_v28 = vmul.f32 0.6931472, %v516_v24 }
  0x3e   : > { %v262_v30 = vmax.f32 %v260_v25, -100.0  ;;  %v268_v31 = vmul.f32 0.6931472, %v518_v27  ;;  %v271_v34 = vmul.f32 %v261_v26, %v255_v20 }
  0x3f   : > { %v269_v33 = vmax.f32 %v266_v28, -100.0 }
  0x40   : > { %v270_v35 = vmax.f32 %v268_v31, -100.0  ;;  %v272_v36 = vmul.f32 %v262_v30, %v256_v23 }
  0x41   : > { %v275_v37 = vmul.f32 %v273_v29, %v269_v33 }
  0x42   : > { %v276_v38 = vmul.f32 %v274_v32, %v270_v35 }
  0x43   : > { %v277_v39 = vadd.f32 %v275_v37, %v271_v34 }
  0x44   : > { %v278_v40 = vadd.f32 %v276_v38, %v272_v36 }
  0x45   : > { %v279_v41 = vsub.f32 0.0, %v277_v39 }
  0x46   : > { %v280_v42 = vsub.f32 0.0, %v278_v40 }
  0x47   : > { %v281_v43 = vsub.f32 0.0, %v279_v41 }
  0x48   : > { %v282_v44 = vsub.f32 0.0, %v280_v42 }
  0x49   : > { %v283_v45 = vmul.f32 1.442695, %v281_v43 }
  0x4a   : > { %v285_v46 = vmul.f32 1.442695, %v282_v44 }
  0x4b   : > { %519 = vpow2.f32 %v283_v45 }
  0x4c   : > { %521 = vpow2.f32 %v285_v46 }
  0x51   : > { %v520_v47 = vpop.eup %519 }
  0x52   : > { %v522_v48 = vpop.eup %521  ;;  %v287_v49 = vsub.f32 1.0, %v520_v47 }
  0x53   : > { %v288_v50 = vsub.f32 1.0, %v522_v48 }
  0x54   : > { %v289_v51 = vmax.f32 %v287_v49, 0.0 }
  0x55   : > { %v290_v52 = vmax.f32 %v288_v50, 0.0 }
  0x56   : > { %v291_v53 = vmul.f32 %v289_v51, %v289_v51 }
  0x57   : > { %v292_v54 = vmul.f32 %v290_v52, %v290_v52 }
  0x58   : > { %v293_v55 = vmul.f32 %v291_v53, %v279_v41 }
  0x59   : > { %v294_v56 = vmul.f32 %v292_v54, %v280_v42 }
  0x5a   : > { %v295_v57 = vsel %vm247_vm0, %v293_v55, 0.0 }
  0x5b   : > { %v296_v58 = vsel %vm248_vm1, %v294_v56, 0.0 }
  0x5c   : > { %v298_v59 = vadd.f32 %v296_v58, %v295_v57 }
  0x5e   : > { %300 = vst [vmem:[%s223_s18] sm:$0xff] %v298_v59 }
  0x5f   : > { %610 = shalt.err (!%p607_p13)
}
  0x60   : > { %445 = dma.vmem_to_hbm [thread:$0]  (%p739_p9), %s315_s20, 128, %s317_s28, %s302_s12  }
  0x61 PF: > { %s328_s3 = sand.u32 1, %s649_s9   ;;  %p455_p0 = pnand %p423_p12, %p746_p11 }
  0x62   : > { %s329_s26 = scalar_lea.sflag [#allocation4], %s328_s3 }
  0x63   : > { %p456_p1 = pneg %p455_p0 }
  0x65   : > { %644 = dma.done.wait (%p456_p1), %s329_s26, 128  }
  0x66   : > { %646 = vsyncadd (%p456_p1), %s329_s26, 4294967168  ;;  %s21_s14 = sadd.s32 1, %s669_s14   ;;  %s845_s9 = smov %s653_s10 }
  0x67   : > { %p18_p2 = scmp.ge.s32.totalorder %s21_s14, 4   ;;  %s846_s10 = smov %s657_s11 }
  0x68   : > { %s847_s11 = smov %s744_s23  ;;  %s848_s12 = smov %s665_s13 }
  0x69   : > { %s849_s13 = smov %s851_s17  ;;  %20 = sbr.rel (!%p18_p2) target bundleno = 8 (0x8), region = 90 }
  0x6e   :  { %335 = vsyncpa [#allocation3], 1 }
  0x6f   :  { %337 = vsyncpa [#allocation3 + $0x1], 1 }
  0x70   :  { %338 = vsyncpa [#allocation6], 1 }
  0x71   :  { %340 = vsyncpa [#allocation6 + $0x1], 1 }
  0x72   :  { %341 = vsyncpa [#allocation4], 1 }
  0x73   :  { %343 = vsyncpa [#allocation4 + $0x1], 1 }

</bundles_post_ra>
